<compile_context>
chip_gen: v6e
topology: v6e:2x2x1
jax: 0.10.0
libtpu: 0.0.40
codegen_flags: <defaults>
</compile_context>

<pallas_src>
import jax
import jax.numpy as jnp
from jax.experimental import pallas as pl
from jax.experimental.pallas import tpu as pltpu


def _round_up(x, m):
    return ((x + m - 1) // m) * m


def _policy_kernel(x_ref, w1_ref, b1_ref, w2_ref, b2_ref, w3_ref, b3_ref,
                   mean_ref):
    # bf16 operands on the MXU, f32 accumulation; bias add + tanh in f32
    # (v5e-safe: no bf16 VPU/EUP there).
    x = x_ref[...].astype(jnp.bfloat16)                                  # [TB, D]

    h1 = jnp.dot(x, w1_ref[...],
                 preferred_element_type=jnp.float32) + b1_ref[...]       # [TB, H] f32
    h1 = jnp.tanh(h1)

    h2 = jnp.dot(h1.astype(jnp.bfloat16), w2_ref[...],
                 preferred_element_type=jnp.float32) + b2_ref[...]       # [TB, H] f32
    h2 = jnp.tanh(h2)

    mean = jnp.dot(h2.astype(jnp.bfloat16), w3_ref[...],
                   preferred_element_type=jnp.float32) + b3_ref[...]     # [TB, N] f32
    mean_ref[...] = mean.astype(mean_ref.dtype)                          # narrow, unpadded store


def prepare_policy_params(params):
    """One-time prep: bf16 matmul operands (weights); biases/log_std stay f32.
    Call once, reuse across forward calls to avoid per-call wrapper ops."""
    return {
        "w1b": params["w1"].astype(jnp.bfloat16),
        "b1": params["b1"],
        "w2b": params["w2"].astype(jnp.bfloat16),
        "b2": params["b2"],
        "w3b": params["w3"].astype(jnp.bfloat16),
        "b3": params["b3"],
        "log_std": params["log_std"],
    }


def policy_forward(x, prepared, *, tile_batch=4096):
    """x: [B, num_inputs] float32. `prepared` from prepare_policy_params().
    Returns (action_mean, action_log_std, action_std)."""
    B, D = x.shape
    w1b, b1 = prepared["w1b"], prepared["b1"]
    w2b, b2 = prepared["w2b"], prepared["b2"]
    w3b, b3 = prepared["w3b"], prepared["b3"]
    log_std = prepared["log_std"]
    num_outputs = w3b.shape[1]

    # ---- balanced batch tiling ----
    # n_tiles = ceil(B / tile_batch); keep it even when >1 so both v7x TCs get
    # tiles; TB = round_up(ceil(B / n_tiles), 8) so padding waste stays small.
    n_tiles = max(1, -(-B // tile_batch))
    if n_tiles > 1 and n_tiles % 2 == 1:
        n_tiles += 1
    TB = _round_up(-(-B // n_tiles), 8)
    B_pad = n_tiles * TB
    if B_pad != B:
        x = jnp.pad(x, ((0, B_pad - B), (0, 0)))

    grid = (n_tiles,)
    # VMEM-resident params: constant index_map, full-array block shape.
    resident = lambda a: pl.BlockSpec(a.shape, lambda i: (0, 0))

    mean_pad = pl.pallas_call(
        _policy_kernel,
        out_shape=jax.ShapeDtypeStruct((B_pad, num_outputs), jnp.float32),
        grid_spec=pltpu.PrefetchScalarGridSpec(
            num_scalar_prefetch=0,
            grid=grid,
            in_specs=[
                pl.BlockSpec((TB, D), lambda i: (i, 0)),   # x: tiled over batch
                resident(w1b), resident(b1),
                resident(w2b), resident(b2),
                resident(w3b), resident(b3),
            ],
            # Last dim equals the full array dim -> legal narrow block; avoids
            # writing 128-lane zero padding to HBM.
            out_specs=pl.BlockSpec((TB, num_outputs), lambda i: (i, 0)),
        ),
        compiler_params=pltpu.CompilerParams(
            dimension_semantics=("parallel",),      # shard batch tiles across TCs (v7x)
            vmem_limit_bytes=32 * 1024 * 1024,      # valid budget on 64 MiB v7x
        ),
    )(x, w1b, b1, w2b, b2, w3b, b3)

    action_mean = mean_pad[:B] if B_pad != B else mean_pad
    # Parameter-only outputs (no batch-dependent compute) -> plain JAX in wrapper.
    action_log_std = jnp.broadcast_to(log_std, action_mean.shape)
    action_std = jnp.exp(action_log_std)
    return action_mean, action_log_std, action_std


def init_policy_params(key, num_inputs, num_outputs, hidden_size=64):
    """nn.Linear default init (uniform +/- 1/sqrt(fan_in)); action_mean.weight*=0.1,
    action_mean.bias*=0.0; action_log_std = zeros(1, num_outputs).
    Weights stored pre-transposed as [in_features, out_features]."""
    k1, k2, k3, k4, k5, k6 = jax.random.split(key, 6)

    def lin(kw, kb, fan_in, fan_out):
        bound = 1.0 / jnp.sqrt(jnp.float32(fan_in))
        w = jax.random.uniform(kw, (fan_in, fan_out), jnp.float32, -bound, bound)
        b = jax.random.uniform(kb, (1, fan_out), jnp.float32, -bound, bound)
        return w, b

    w1, b1 = lin(k1, k2, num_inputs, hidden_size)
    w2, b2 = lin(k3, k4, hidden_size, hidden_size)
    w3, b3 = lin(k5, k6, hidden_size, num_outputs)
    w3 = w3 * 0.1
    b3 = b3 * 0.0
    log_std = jnp.zeros((1, num_outputs), jnp.float32)
    return {"w1": w1, "b1": b1, "w2": w2, "b2": b2, "w3": w3, "b3": b3,
            "log_std": log_std}


def _reference_forward(x, p):
    h1 = jnp.tanh(x @ p["w1"] + p["b1"])
    h2 = jnp.tanh(h1 @ p["w2"] + p["b2"])
    mean = h2 @ p["w3"] + p["b3"]
    log_std = jnp.broadcast_to(p["log_std"], mean.shape)
    return mean, log_std, jnp.exp(log_std)


if __name__ == "__main__":
    key = jax.random.PRNGKey(0)
    kx, kp = jax.random.split(key)

    batch = 8
    num_inputs = 16
    num_outputs = 4
    hidden_size = 32

    x = jax.random.normal(kx, (batch, num_inputs), jnp.float32)
    params = init_policy_params(kp, num_inputs, num_outputs, hidden_size)
    prepared = prepare_policy_params(params)

    mean, log_std, std = policy_forward(x, prepared)
    mean = jax.block_until_ready(mean)

    ref_mean, ref_log_std, ref_std = _reference_forward(x, params)
    assert mean.shape == (batch, num_outputs)
    assert log_std.shape == (batch, num_outputs)
    assert std.shape == (batch, num_outputs)
    # bf16 matmul operands (f32 accumulation) vs. pure-f32 reference -> loose tol.
    assert jnp.allclose(mean, ref_mean, atol=2e-2, rtol=2e-2), "action_mean mismatch"
    assert jnp.allclose(log_std, ref_log_std), "action_log_std mismatch"
    assert jnp.allclose(std, ref_std), "action_std mismatch"

    print("KERNEL_OK")
</pallas_src>

<mosaic_0001>
module attributes {stable_mosaic.version = 11 : i64} {
  func.func @_policy_kernel(%arg0: i32, %arg1: memref<8x16xf32, #tpu.memory_space<vmem>>, %arg2: memref<16x32xbf16, #tpu.memory_space<vmem>>, %arg3: memref<1x32xf32, #tpu.memory_space<vmem>>, %arg4: memref<32x32xbf16, #tpu.memory_space<vmem>>, %arg5: memref<1x32xf32, #tpu.memory_space<vmem>>, %arg6: memref<32x4xbf16, #tpu.memory_space<vmem>>, %arg7: memref<1x4xf32, #tpu.memory_space<vmem>>, %arg8: memref<8x4xf32, #tpu.memory_space<vmem>>) attributes {dimension_semantics = [#tpu.dimension_semantics<parallel>], iteration_bounds = array<i64: 1>, scalar_prefetch = 0 : i64, scratch_operands = 0 : i64, tpu.core_type = #tpu.core_type<tc>, window_params = [{transform_indices = @transform_0, window_bounds = array<i64: 8, 16>}, {pipeline_mode = #tpu.pipeline_mode<synchronous>, transform_indices = @transform_1, window_bounds = array<i64: 16, 32>}, {pipeline_mode = #tpu.pipeline_mode<synchronous>, transform_indices = @transform_2, window_bounds = array<i64: 1, 32>}, {pipeline_mode = #tpu.pipeline_mode<synchronous>, transform_indices = @transform_3, window_bounds = array<i64: 32, 32>}, {pipeline_mode = #tpu.pipeline_mode<synchronous>, transform_indices = @transform_4, window_bounds = array<i64: 1, 32>}, {pipeline_mode = #tpu.pipeline_mode<synchronous>, transform_indices = @transform_5, window_bounds = array<i64: 32, 4>}, {pipeline_mode = #tpu.pipeline_mode<synchronous>, transform_indices = @transform_6, window_bounds = array<i64: 1, 4>}, {transform_indices = @transform_7, window_bounds = array<i64: 8, 4>}]} {
    %c0 = arith.constant 0 : index
    %c0_0 = arith.constant 0 : index
    %0 = vector.load %arg1[%c0, %c0_0] : memref<8x16xf32, #tpu.memory_space<vmem>>, vector<8x16xf32>
    %1 = arith.truncf %0 : vector<8x16xf32> to vector<8x16xbf16>
    %c0_1 = arith.constant 0 : index
    %c0_2 = arith.constant 0 : index
    %2 = vector.load %arg2[%c0_1, %c0_2] : memref<16x32xbf16, #tpu.memory_space<vmem>>, vector<16x32xbf16>
    %cst = arith.constant dense<0.000000e+00> : vector<8x32xf32>
    %3 = tpu.matmul %1, %2, %cst {dimension_numbers = #tpu.dot_dimension_numbers<[1], [0], [0], [1], [0, 0, 1, 1], [], []>} : vector<8x16xbf16>, vector<16x32xbf16>, vector<8x32xf32> -> vector<8x32xf32>
    %c0_3 = arith.constant 0 : index
    %c0_4 = arith.constant 0 : index
    %4 = vector.load %arg3[%c0_3, %c0_4] : memref<1x32xf32, #tpu.memory_space<vmem>>, vector<1x32xf32>
    %5 = vector.broadcast %4 : vector<1x32xf32> to vector<8x32xf32>
    %6 = arith.addf %3, %5 : vector<8x32xf32>
    %7 = math.tanh %6 : vector<8x32xf32>
    %8 = arith.truncf %7 : vector<8x32xf32> to vector<8x32xbf16>
    %c0_5 = arith.constant 0 : index
    %c0_6 = arith.constant 0 : index
    %9 = vector.load %arg4[%c0_5, %c0_6] : memref<32x32xbf16, #tpu.memory_space<vmem>>, vector<32x32xbf16>
    %cst_7 = arith.constant dense<0.000000e+00> : vector<8x32xf32>
    %10 = tpu.matmul %8, %9, %cst_7 {dimension_numbers = #tpu.dot_dimension_numbers<[1], [0], [0], [1], [0, 0, 1, 1], [], []>} : vector<8x32xbf16>, vector<32x32xbf16>, vector<8x32xf32> -> vector<8x32xf32>
    %c0_8 = arith.constant 0 : index
    %c0_9 = arith.constant 0 : index
    %11 = vector.load %arg5[%c0_8, %c0_9] : memref<1x32xf32, #tpu.memory_space<vmem>>, vector<1x32xf32>
    %12 = vector.broadcast %11 : vector<1x32xf32> to vector<8x32xf32>
    %13 = arith.addf %10, %12 : vector<8x32xf32>
    %14 = math.tanh %13 : vector<8x32xf32>
    %15 = arith.truncf %14 : vector<8x32xf32> to vector<8x32xbf16>
    %c0_10 = arith.constant 0 : index
    %c0_11 = arith.constant 0 : index
    %16 = vector.load %arg6[%c0_10, %c0_11] : memref<32x4xbf16, #tpu.memory_space<vmem>>, vector<32x4xbf16>
    %cst_12 = arith.constant dense<0.000000e+00> : vector<8x4xf32>
    %17 = tpu.matmul %15, %16, %cst_12 {dimension_numbers = #tpu.dot_dimension_numbers<[1], [0], [0], [1], [0, 0, 1, 1], [], []>} : vector<8x32xbf16>, vector<32x4xbf16>, vector<8x4xf32> -> vector<8x4xf32>
    %c0_13 = arith.constant 0 : index
    %c0_14 = arith.constant 0 : index
    %18 = vector.load %arg7[%c0_13, %c0_14] : memref<1x4xf32, #tpu.memory_space<vmem>>, vector<1x4xf32>
    %19 = vector.broadcast %18 : vector<1x4xf32> to vector<8x4xf32>
    %20 = arith.addf %17, %19 : vector<8x4xf32>
    %c0_15 = arith.constant 0 : index
    %c0_16 = arith.constant 0 : index
    %21 = vector.load %arg8[%c0_15, %c0_16] : memref<8x4xf32, #tpu.memory_space<vmem>>, vector<8x4xf32>
    tpu.vector_store %arg8[%c0_15, %c0_16], %20 {strides = array<i32>} : memref<8x4xf32, #tpu.memory_space<vmem>>, vector<8x4xf32>,
    return
  }
  func.func @transform_0(%arg0: i32) -> (i32, i32) {
    %c0_i32 = arith.constant 0 : i32
    %c0_i32_0 = arith.constant 0 : i32
    return %arg0, %c0_i32 : i32, i32
  }
  func.func @transform_1(%arg0: i32) -> (i32, i32) {
    %c0_i32 = arith.constant 0 : i32
    %c0_i32_0 = arith.constant 0 : i32
    %c0_i32_1 = arith.constant 0 : i32
    return %c0_i32, %c0_i32_0 : i32, i32
  }
  func.func @transform_2(%arg0: i32) -> (i32, i32) {
    %c0_i32 = arith.constant 0 : i32
    %c0_i32_0 = arith.constant 0 : i32
    %c0_i32_1 = arith.constant 0 : i32
    return %c0_i32, %c0_i32_0 : i32, i32
  }
  func.func @transform_3(%arg0: i32) -> (i32, i32) {
    %c0_i32 = arith.constant 0 : i32
    %c0_i32_0 = arith.constant 0 : i32
    %c0_i32_1 = arith.constant 0 : i32
    return %c0_i32, %c0_i32_0 : i32, i32
  }
  func.func @transform_4(%arg0: i32) -> (i32, i32) {
    %c0_i32 = arith.constant 0 : i32
    %c0_i32_0 = arith.constant 0 : i32
    %c0_i32_1 = arith.constant 0 : i32
    return %c0_i32, %c0_i32_0 : i32, i32
  }
  func.func @transform_5(%arg0: i32) -> (i32, i32) {
    %c0_i32 = arith.constant 0 : i32
    %c0_i32_0 = arith.constant 0 : i32
    %c0_i32_1 = arith.constant 0 : i32
    return %c0_i32, %c0_i32_0 : i32, i32
  }
  func.func @transform_6(%arg0: i32) -> (i32, i32) {
    %c0_i32 = arith.constant 0 : i32
    %c0_i32_0 = arith.constant 0 : i32
    %c0_i32_1 = arith.constant 0 : i32
    return %c0_i32, %c0_i32_0 : i32, i32
  }
  func.func @transform_7(%arg0: i32) -> (i32, i32) {
    %c0_i32 = arith.constant 0 : i32
    %c0_i32_0 = arith.constant 0 : i32
    return %arg0, %c0_i32 : i32, i32
  }
}

</mosaic_0001>

<bundles_post_ra>
// kernel: tpu_custom_call.1
= control target key start
LH: loop header
LB: loop body
LE: loop exit
PB: predicated region body
PF: predicated region fallthrough
CT: control target
= control target key end

     0   :  { %12 = vsyncpa [#allocation3], 0  ;;  %s437_s0 = inlined_call_operand.hbm [shape: f32[8,16], index: 0, kind: input, shape index: {}]   ;;  %s438_s1 = inlined_call_operand.hbm [shape: bf16[16,32], index: 1, kind: input, shape index: {}]   ;;  %s439_s2 = inlined_call_operand.vmem [shape: f32[1,32], index: 2, kind: input, shape index: {}]   ;;  %s440_s3 = inlined_call_operand.vmem [shape: bf16[32,32], index: 3, kind: input, shape index: {}]   ;;  %s441_s4 = inlined_call_operand.vmem [shape: f32[1,32], index: 4, kind: input, shape index: {}]   ;;  %s442_s5 = inlined_call_operand.vmem [shape: bf16[32,4], index: 5, kind: input, shape index: {}]   ;;  %s443_s6 = inlined_call_operand.vmem [shape: f32[1,4], index: 6, kind: input, shape index: {}]   ;;  %s444_s7 = inlined_call_operand.vmem [shape: f32[8,4], index: 7, kind: output, shape index: {}]  }
   0x1   :  { %13 = vsyncpa [#allocation5], 0  ;;  %s359_s24 = smov [#allocation2]   ;;  %s360_s26 = smov [#allocation4]  }
   0x2   :  { %s20_s25 = sshll.u32 %s359_s24, 4  ;;  %s29_s27 = sshll.u32 %s360_s26, 4  ;;  %s21_s25 = int_to_ptr.vmem [resolvable:$true] %s20_s25  ;;  %s30_s27 = int_to_ptr.vmem [resolvable:$true] %s29_s27 }
   0x3   :  { %s323_s28 = scalar_lea.vmem %s21_s25, 128  ;;  %p328_p1 = scmp.lt.s32.totalorder %s21_s25, %s21_s25 }
   0x4   :  { %p324_p0 = scmp.ne.s32.totalorder %s21_s25, %s323_s28  ;;  %p329_p2 = scmp.lt.s32.totalorder %s323_s28, %s323_s28 }
   0x6   :  { %p330_p3 = por %p329_p2, %p328_p1 }
   0x8   :  { %p331_p4 = pnand %p330_p3, %p324_p0 }
   0xa   :  { %334 = shalt.err (!%p331_p4)
}
   0xb   :  { %23 = dma.hbm_to_vmem [thread:$0]  %s437_s0, 128, %s21_s25, [#allocation3]  }
   0xc   :  { %s343_s8 = scalar_lea.vmem %s30_s27, 128  ;;  %p348_p6 = scmp.lt.s32.totalorder %s30_s27, %s30_s27 }
   0xd   :  { %p344_p5 = scmp.ne.s32.totalorder %s30_s27, %s343_s8  ;;  %p349_p7 = scmp.lt.s32.totalorder %s343_s8, %s343_s8 }
   0xf   :  { %p350_p8 = por %p349_p7, %p348_p6 }
  0x11   :  { %p351_p9 = pnand %p350_p8, %p344_p5 }
  0x13   :  { %354 = shalt.err (!%p351_p9)
}
  0x14   :  { %s361_s9 = smov 64   ;;  %s362_s10 = smov 4  }
  0x15   :  { %35 = dma.hbm_to_vmem [thread:$0]  %s438_s1, 128, %s30_s27, [#allocation5], %s361_s9, %s361_s9, %s362_s10  }
  0x16   :  { %355 = dma.done.wait [#allocation3], 128  }
  0x17   :  { %356 = vsyncadd [#allocation3], 4294967168 }
  0x18   :  { %357 = dma.done.wait [#allocation5], 128  }
  0x19   :  { %358 = vsyncadd [#allocation5], 4294967168  ;;  %v363_v0 = vmov 0.0   ;;  %vm364_vm0 = vmmov 0   ;;  %v306_v1 = vld [vmem:[#allocation4] sm:$0xff]   ;;  %v53_v2 = vld [vmem:[#allocation2] sm:$0xff] }
  0x1a   :  { %278 = vmatprep.subr.bf16.mxu0 %v363_v0  ;;  %280 = vmatprep.mubr.msk.bf16.mxu0 %vm364_vm0, %v363_v0  ;;  %vm70_vm1 = vcmask 130048   ;;  %v54_v3 = vpack.c.bf16 %v53_v2, %v53_v2  ;;  %v307_v4 = vld [vmem:[%s440_s3 + $0x8] sm:$0xff]   ;;  %v308_v5 = vld [vmem:[%s440_s3] sm:$0xff]   ;;  %vm139_vm2 = vcmask 261120   ;;  %vm251_vm3 = vcmask 31744  }
  0x1b   :  { %284 = vmatprep.subr.bf16.mxu1 %v363_v0  ;;  %288 = vmatprep.mubr.msk.bf16.mxu1 %vm364_vm0, %v363_v0  ;;  %v259_v6 = vld [vmem:[%s439_s2] ss:$0 sm:$0xff]  ;;  %v309_v14 = vld [vmem:[%s442_s5 + $0x8] sm:$0xff]  }
  0x1c   :  { %279 = vmatpush3.bf16.msra.mxu0 %v306_v1  ;;  %285 = vmatpush3.bf16.msra.mxu1 %v307_v4  ;;  %v310_v15 = vld [vmem:[%s442_s5] sm:$0xff]  }
  0x1d   :  { %292 = vmatprep.subr.bf16.mxu0 %v363_v0  ;;  %286 = vmatprep.subr.bf16.mxu1 %v363_v0  ;;  %v262_v16 = vld [vmem:[%s441_s4] ss:$0 sm:$0xff] }
  0x1e   :  { %v266_v24 = vld [vmem:[%s443_s6] ss:$0 sm:$0xff] }
  0x1f   :  { %281 = vmatmul.mubr.msk.bf16.vlgmr.msra.gmra.mxu0 %vm70_vm1, %v54_v3 }
  0x20   :  { %296 = vmatprep.mubr.msk.bf16.mxu0 %vm364_vm0, %v363_v0  ;;  %287 = vmatpush3.bf16.msra.mxu1 %v308_v5 }
  0x21   :  { %293 = vmatpush3.bf16.msra.mxu0 %v309_v14 }
  0x22   :  { %294 = vmatprep.subr.bf16.mxu0 %v363_v0 }
  0x25   :  { %295 = vmatpush3.bf16.msra.mxu0 %v310_v15 }
  0xdf   :  { %v108_v7 = vpop.f32.mrf.mxu0 }
  0xe0   :  { %v109_v8 = vadd.f32 %v259_v6, %v108_v7 }
  0xe1   :  { %v282_v9 = vpop.f32.mrf.mxu0 }
  0xe2   :  { %311 = vtanh.f32 %v109_v8 }
  0xe3   :  { %v111_v10 = vpop.f32.mrf.mxu0 }
  0xe5   :  { %v283_v11 = vpop.f32.mrf.mxu0 }
  0xef   :  { %v312_v12 = vpop.eup %311 }
  0xf0   :  { %v115_v13 = vpack.c.bf16 %v312_v12, %v312_v12 }
  0xf2   :  { %289 = vmatmul.mubr.msk.bf16.vlgmr.msra.gmra.mxu1 %vm139_vm2, %v115_v13 }
 0x1b2   :  { %v177_v17 = vpop.f32.mrf.mxu1 }
 0x1b3   :  { %v178_v18 = vadd.f32 %v262_v16, %v177_v17 }
 0x1b4   :  { %v290_v19 = vpop.f32.mrf.mxu1 }
 0x1b5   :  { %313 = vtanh.f32 %v178_v18 }
 0x1b6   :  { %v180_v20 = vpop.f32.mrf.mxu1 }
 0x1b8   :  { %v291_v21 = vpop.f32.mrf.mxu1 }
 0x1c2   :  { %v314_v22 = vpop.eup %313 }
 0x1c3   :  { %v184_v23 = vpack.c.bf16 %v314_v22, %v314_v22 }
 0x1c5   :  { %297 = vmatmul.mubr.msk.bf16.vlgmr.msra.gmra.mxu0 %vm139_vm2, %v184_v23 }
 0x285   :  { %v245_v25 = vpop.f32.mrf.mxu0 }
 0x286   :  { %v246_v26 = vadd.f32 %v266_v24, %v245_v25 }
 0x287   :  { %v298_v27 = vpop.f32.mrf.mxu0 }
 0x288   :  { %252 = vst.msk [vmem:[%s444_s7] sm:$0xff] %vm251_vm3, %v246_v26 }
 0x289   :  { %v248_v28 = vpop.f32.mrf.mxu0 }
 0x28b   :  { %v299_v29 = vpop.f32.mrf.mxu0 }
 0x28c   :  { %257 = vsyncpa [#allocation3], 1 }
 0x28d   :  { %258 = vsyncpa [#allocation5], 1 }

</bundles_post_ra>
